<compile_context>
chip_gen: v7x
topology: tpu7x:2x2x1
jax: 0.10.0
libtpu: 0.0.40
codegen_flags: <defaults>
</compile_context>

<pallas_src>
import functools

import jax
import jax.numpy as jnp
from jax import lax
from jax.experimental import pallas as pl
from jax.experimental.pallas import tpu as pltpu


# ---------------------------------------------------------------------------
# Kernels
# ---------------------------------------------------------------------------

def _flash_attn_kernel(q_ref, k_ref, v_ref, o_ref, lse_ref,
                       m_sc, l_sc, acc_sc, *, scale, kv_len, exp_dtype):
    """Online-softmax attention. Blocks: q (G,tq,Dk) k/v (G,tk,D) o (G,tq,Dv)."""
    ki = pl.program_id(2)

    @pl.when(ki == 0)
    def _init():
        m_sc[...] = jnp.full_like(m_sc, -jnp.inf)
        l_sc[...] = jnp.zeros_like(l_sc)
        acc_sc[...] = jnp.zeros_like(acc_sc)

    # Fold 1/temperature into q (tq*Dk VPU multiply) instead of scaling the
    # (G,tq,tk) scores tile (tq*tk multiply). Do NOT pre-scale in the wrapper.
    q = (q_ref[...] * scale).astype(q_ref.dtype)
    k = k_ref[...]
    v = v_ref[...]

    # Contraction on the lane dim, batched over the G grouped heads; f32 acc.
    s = jnp.einsum("gqd,gkd->gqk", q, k,
                   preferred_element_type=jnp.float32)            # (G,tq,tk)

    if kv_len is not None:
        # Keys >= kv_len are wrapper-introduced padding: mask them out.
        tk = s.shape[-1]
        kpos = ki * tk + lax.broadcasted_iota(jnp.int32, (1, 1, tk), 2)
        s = jnp.where(kpos < kv_len, s, -1e30)

    m_prev = m_sc[...]
    m_new = jnp.maximum(m_prev, jnp.max(s, axis=-1, keepdims=True))
    alpha = jnp.exp(m_prev - m_new)                               # (G,tq,1) f32
    # Big exp over the scores tile; bf16 on v6e/v7x for bf16 inputs (2x EUP).
    p = jnp.exp((s - m_new).astype(exp_dtype))

    l_sc[...] = alpha * l_sc[...] + jnp.sum(p, axis=-1, keepdims=True,
                                            dtype=jnp.float32)
    pv = jnp.einsum("gqk,gkd->gqd", p.astype(v.dtype), v,
                    preferred_element_type=jnp.float32)           # (G,tq,Dv)
    acc_sc[...] = alpha * acc_sc[...] + pv
    m_sc[...] = m_new

    @pl.when(ki == pl.num_programs(2) - 1)
    def _finalize():
        inv_l = pl.reciprocal(l_sc[...], approx=True)             # EUP vrcp
        o_ref[...] = (acc_sc[...] * inv_l).astype(o_ref.dtype)
        lse_ref[...] = m_sc[...] + jnp.log(l_sc[...])


def _attn_weights_kernel(q_ref, k_ref, lse_ref, attn_ref, *, scale, exp_dtype):
    """API path: attn tile = exp(scale*q@k^T - lse). Fully parallel grid."""
    q = (q_ref[...] * scale).astype(q_ref.dtype)
    s = jnp.einsum("gqd,gkd->gqk", q, k_ref[...],
                   preferred_element_type=jnp.float32)
    attn_ref[...] = jnp.exp((s - lse_ref[...]).astype(exp_dtype)
                            ).astype(attn_ref.dtype)


# ---------------------------------------------------------------------------
# Generation config & tiling heuristics
# ---------------------------------------------------------------------------

def _tpu_config():
    """Per-generation per-step VMEM budget, scoped-VMEM limit and TC count."""
    kind = ""
    try:
        kind = jax.devices()[0].device_kind.lower()
    except Exception:
        pass
    if "v2" in kind or "v3" in kind:        # small-VMEM parts: stay conservative
        return {"gen": 3, "budget": 6 << 20, "vmem_limit": None, "cores": 1}
    if "v7" in kind:                        # 64 MiB physical VMEM, 2 TCs/chip
        return {"gen": 7, "budget": 22 << 20, "vmem_limit": 44 << 20, "cores": 2}
    if "v5 lite" in kind or "v5e" in kind:  # 128 MiB VMEM, 1 TC
        return {"gen": 5, "budget": 13 << 20, "vmem_limit": 48 << 20, "cores": 1}
    if "v4" in kind or "v5" in kind:        # v4 / v5p: 128 MiB VMEM, megacore
        return {"gen": 5, "budget": 13 << 20, "vmem_limit": 48 << 20, "cores": 2}
    # default / v6e: 128 MiB VMEM, 1 TC
    return {"gen": 6, "budget": 26 << 20, "vmem_limit": 64 << 20, "cores": 1}


def _pad_len(L):
    """Pad lengths > 128 up to a multiple of 128 (MXU/lane-friendly tiles)."""
    if L > 128 and L % 128 != 0:
        return ((L + 127) // 128) * 128
    return L


def _tile_candidates(L):
    """Descending MXU-friendly tile sizes for a (padded) length L."""
    if L <= 512:
        return [L]
    cands = [t for t in (512, 384, 256, 128) if L % t == 0]
    return cands or [128]


def _choose_flash_tiling(BH, Lq, Lk, Dk, Dv, itemsize, cfg):
    """(tq, tk, G): grow tq first, then tk, then the head group G."""
    budget = cfg["budget"]

    def step_bytes(g, tq, tk):
        # double-buffered q/k/v/o/lse tiles + f32 scratch + f32 scores/p temps
        io = 2 * itemsize * (tq * Dk + tk * (Dk + Dv) + tq * Dv) + 2 * 4 * tq
        scratch = 4 * (tq * Dv + 2 * tq)
        tmp = 2 * 4 * tq * tk
        return g * (io + scratch + tmp)

    g_cands = [g for g in (32, 16, 12, 8, 6, 4, 3, 2, 1) if BH % g == 0]

    for tq in _tile_candidates(Lq):          # K/V HBM re-reads scale with Lq/tq
        for tk in _tile_candidates(Lk):      # keep tk >= 256 when budget allows
            if step_bytes(1, tq, tk) > budget:
                continue
            fits = [g for g in g_cands if step_bytes(g, tq, tk) <= budget]
            G = fits[0]
            if cfg["cores"] > 1:
                # Prefer a parallel extent that shards cleanly across TCs.
                q_steps = Lq // tq
                for g in fits:
                    steps = (BH // g) * q_steps
                    if steps >= cfg["cores"] and steps % cfg["cores"] == 0:
                        G = g
                        break
            return tq, tk, G
    return _tile_candidates(Lq)[-1], _tile_candidates(Lk)[-1], 1


def _choose_attn_tiling(BH, Lq, Lk, Dk, out_itemsize, in_itemsize, cfg):
    """Independent (tq, tk, G) for the HBM-write-bound weights kernel."""
    budget = cfg["budget"]

    def step_bytes(g, tq, tk):
        io = 2 * in_itemsize * (tq * Dk + tk * Dk) + 2 * 4 * tq
        out = 2 * out_itemsize * tq * tk      # double-buffered (tq,tk) output
        tmp = 4 * tq * tk                     # f32 scores temporary
        return g * (io + out + tmp)

    g_cands = [g for g in (32, 16, 12, 8, 6, 4, 3, 2, 1) if BH % g == 0]
    for tq in _tile_candidates(Lq):
        for tk in _tile_candidates(Lk):
            if step_bytes(1, tq, tk) > budget:
                continue
            for g in g_cands:
                if step_bytes(g, tq, tk) <= budget:
                    return tq, tk, g
    return _tile_candidates(Lq)[-1], _tile_candidates(Lk)[-1], 1


# ---------------------------------------------------------------------------
# Wrapper
# ---------------------------------------------------------------------------

def scaled_dot_product_attention(q, k, v, temperature, *, return_attn=True,
                                 compute_dtype=None, attn_dtype=None):
    """Pallas TPU scaled dot-product attention (mask=None, eval-mode dropout).

    compute_dtype: optional opt-in (e.g. jnp.bfloat16) for the matmul path
      when callers pass f32 inputs (changes numerics; outputs stay in the
      original dtype).
    attn_dtype: optional dtype for the returned attention weights.
    """
    orig_dtype = q.dtype
    B, H, Lq, Dk = q.shape
    Lk = k.shape[2]
    Dv = v.shape[3]
    BH = B * H

    if compute_dtype is not None:
        q = q.astype(compute_dtype)
        k = k.astype(compute_dtype)
        v = v.astype(compute_dtype)
    attn_out_dtype = attn_dtype if attn_dtype is not None else orig_dtype

    # Free reshape of contiguous leading dims.
    qf = q.reshape(BH, Lq, Dk)
    kf = k.reshape(BH, Lk, Dk)
    vf = v.reshape(BH, Lk, Dv)

    # Pad irregular lengths to a multiple of 128; padded keys get masked.
    Lq_p, Lk_p = _pad_len(Lq), _pad_len(Lk)
    if Lq_p != Lq:
        qf = jnp.pad(qf, ((0, 0), (0, Lq_p - Lq), (0, 0)))
    if Lk_p != Lk:
        kf = jnp.pad(kf, ((0, 0), (0, Lk_p - Lk), (0, 0)))
        vf = jnp.pad(vf, ((0, 0), (0, Lk_p - Lk), (0, 0)))
    kv_len = Lk if Lk_p != Lk else None

    cfg = _tpu_config()
    itemsize = jnp.dtype(qf.dtype).itemsize
    tq, tk, G = _choose_flash_tiling(BH, Lq_p, Lk_p, Dk, Dv, itemsize, cfg)

    scale = float(1.0 / temperature)
    exp_dtype = (jnp.bfloat16
                 if (qf.dtype == jnp.bfloat16 and cfg["gen"] >= 6
                     and Dk <= 64 and Dv <= 64)
                 else jnp.float32)

    cparams = dict(dimension_semantics=("parallel", "parallel", "arbitrary"))
    if cfg["vmem_limit"]:
        cparams["vmem_limit_bytes"] = cfg["vmem_limit"]

    grid = (BH // G, Lq_p // tq, Lk_p // tk)

    # -- main (output) kernel: flash attention, no O(L^2) HBM writeback ------
    out_f, lse = pl.pallas_call(
        functools.partial(_flash_attn_kernel, scale=scale, kv_len=kv_len,
                          exp_dtype=exp_dtype),
        out_shape=(
            jax.ShapeDtypeStruct((BH, Lq_p, Dv), orig_dtype),
            jax.ShapeDtypeStruct((BH, Lq_p, 1), jnp.float32),
        ),
        grid_spec=pltpu.PrefetchScalarGridSpec(
            num_scalar_prefetch=0,
            grid=grid,
            in_specs=[
                pl.BlockSpec((G, tq, Dk), lambda g, qi, ki: (g, qi, 0)),
                # TODO(synk): if xprof ever shows exposed K/V DMA (small tq/Dk,
                # large tk), try pipeline_mode=pl.Buffered(3) on these two.
                pl.BlockSpec((G, tk, Dk), lambda g, qi, ki: (g, ki, 0)),
                pl.BlockSpec((G, tk, Dv), lambda g, qi, ki: (g, ki, 0)),
            ],
            out_specs=(
                pl.BlockSpec((G, tq, Dv), lambda g, qi, ki: (g, qi, 0)),
                pl.BlockSpec((G, tq, 1), lambda g, qi, ki: (g, qi, 0)),
            ),
            scratch_shapes=[
                pltpu.VMEM((G, tq, 1), jnp.float32),    # running max m
                pltpu.VMEM((G, tq, 1), jnp.float32),    # running sum l
                pltpu.VMEM((G, tq, Dv), jnp.float32),   # output accumulator
            ],
        ),
        compiler_params=pltpu.CompilerParams(**cparams),
    )(qf, kf, vf)

    out = out_f[:, :Lq, :] if Lq_p != Lq else out_f
    out = out.reshape(B, H, Lq, Dv)

    if not return_attn:
        return out, None

    # -- secondary kernel: materialize attention weights from lse ------------
    tq2, tk2, G2 = _choose_attn_tiling(
        BH, Lq_p, Lk_p, Dk, jnp.dtype(attn_out_dtype).itemsize, itemsize, cfg)
    cparams2 = dict(dimension_semantics=("parallel", "parallel", "parallel"))
    if cfg["vmem_limit"]:
        cparams2["vmem_limit_bytes"] = cfg["vmem_limit"]

    attn_f = pl.pallas_call(
        functools.partial(_attn_weights_kernel, scale=scale,
                          exp_dtype=exp_dtype),
        out_shape=jax.ShapeDtypeStruct((BH, Lq_p, Lk_p), attn_out_dtype),
        grid_spec=pltpu.PrefetchScalarGridSpec(
            num_scalar_prefetch=0,
            grid=(BH // G2, Lq_p // tq2, Lk_p // tk2),
            in_specs=[
                pl.BlockSpec((G2, tq2, Dk), lambda g, qi, ki: (g, qi, 0)),
                pl.BlockSpec((G2, tk2, Dk), lambda g, qi, ki: (g, ki, 0)),
                pl.BlockSpec((G2, tq2, 1), lambda g, qi, ki: (g, qi, 0)),
            ],
            out_specs=pl.BlockSpec((G2, tq2, tk2),
                                   lambda g, qi, ki: (g, qi, ki)),
        ),
        compiler_params=pltpu.CompilerParams(**cparams2),
    )(qf, kf, lse)

    attn = attn_f[:, :Lq, :Lk] if (Lq_p != Lq or Lk_p != Lk) else attn_f
    attn = attn.reshape(B, H, Lq, Lk)
    return out, attn


# ---------------------------------------------------------------------------
# Reference + tests
# ---------------------------------------------------------------------------

def _reference(q, k, v, temperature):
    scores = jnp.einsum("bhqd,bhkd->bhqk",
                        q.astype(jnp.float32) / temperature,
                        k.astype(jnp.float32))
    attn = jax.nn.softmax(scores, axis=-1)
    out = jnp.einsum("bhqk,bhkd->bhqd", attn, v.astype(jnp.float32))
    return out, attn


if __name__ == "__main__":
    def run_case(B, H, Lq, Lk, Dk, Dv, dtype, seed, tol, check_fast_path=False):
        kq, kk, kv = jax.random.split(jax.random.PRNGKey(seed), 3)
        temperature = float(Dk) ** 0.5
        q = jax.random.normal(kq, (B, H, Lq, Dk)).astype(dtype)
        k = jax.random.normal(kk, (B, H, Lk, Dk)).astype(dtype)
        v = jax.random.normal(kv, (B, H, Lk, Dv)).astype(dtype)

        out, attn = scaled_dot_product_attention(q, k, v, temperature)
        out = jax.block_until_ready(out)
        attn = jax.block_until_ready(attn)

        ref_out, ref_attn = _reference(q, k, v, temperature)
        assert out.shape == (B, H, Lq, Dv)
        assert attn.shape == (B, H, Lq, Lk)
        assert jnp.allclose(out.astype(jnp.float32), ref_out,
                            atol=tol, rtol=tol), f"out mismatch {dtype} L={Lq}"
        assert jnp.allclose(attn.astype(jnp.float32), ref_attn,
                            atol=tol, rtol=tol), f"attn mismatch {dtype} L={Lq}"

        if check_fast_path:
            out2, none_attn = scaled_dot_product_attention(
                q, k, v, temperature, return_attn=False)
            out2 = jax.block_until_ready(out2)
            assert none_attn is None
            assert jnp.allclose(out2.astype(jnp.float32), ref_out,
                                atol=tol, rtol=tol)

    # 1) Module-typical small shape (also checks the return_attn=False path).
    run_case(2, 4, 8, 8, 32, 32, jnp.float32, 0, 2e-3, check_fast_path=True)
    # 2) 128-aligned length: single large tile per head (tq=tk=384).
    run_case(1, 2, 384, 384, 64, 64, jnp.float32, 1, 2e-3)
    # 3) Irregular length: pad-to-128 + key masking + multi-step online
    #    softmax (Lk padded to 640 -> 5 reduction tiles of 128).
    run_case(1, 2, 600, 600, 64, 64, jnp.float32, 2, 2e-3)
    # 4) bf16 inputs: bf16 MXU path (+ bf16 exp on v6e/v7x), loose tolerance.
    run_case(2, 4, 8, 8, 32, 32, jnp.bfloat16, 3, 6e-2)

    print("KERNEL_OK")
</pallas_src>

<mosaic_0001>
module attributes {stable_mosaic.version = 11 : i64} {
  func.func @_flash_attn_kernel(%arg0: i32, %arg1: i32, %arg2: i32, %arg3: memref<8x8x32xf32, #tpu.memory_space<vmem>>, %arg4: memref<8x8x32xf32, #tpu.memory_space<vmem>>, %arg5: memref<8x8x32xf32, #tpu.memory_space<vmem>>, %arg6: memref<8x8x32xf32, #tpu.memory_space<vmem>>, %arg7: memref<8x8x1xf32, #tpu.memory_space<vmem>>, %arg8: memref<8x8x1xf32, #tpu.memory_space<vmem>>, %arg9: memref<8x8x1xf32, #tpu.memory_space<vmem>>, %arg10: memref<8x8x32xf32, #tpu.memory_space<vmem>>) attributes {dimension_semantics = [#tpu.dimension_semantics<parallel>, #tpu.dimension_semantics<parallel>, #tpu.dimension_semantics<arbitrary>], iteration_bounds = array<i64: 1, 1, 1>, scalar_prefetch = 0 : i64, scratch_operands = 3 : i64, tpu.core_type = #tpu.core_type<tc>, window_params = [{transform_indices = @transform_0, window_bounds = array<i64: 8, 8, 32>}, {transform_indices = @transform_1, window_bounds = array<i64: 8, 8, 32>}, {transform_indices = @transform_2, window_bounds = array<i64: 8, 8, 32>}, {transform_indices = @transform_3, window_bounds = array<i64: 8, 8, 32>}, {transform_indices = @transform_4, window_bounds = array<i64: 8, 8, 1>}]} {
    %c0_i32 = arith.constant 0 : i32
    %0 = arith.cmpi eq, %arg2, %c0_i32 : i32
    %1 = arith.extui %0 : i1 to i32
    %c0_i32_0 = arith.constant 0 : i32
    %2 = arith.cmpi ne, %1, %c0_i32_0 : i32
    scf.if %2 {
      %cst_33 = arith.constant 0xFF800000 : f32
      %34 = vector.broadcast %cst_33 : f32 to vector<8x8x1xf32>
      %c0_34 = arith.constant 0 : index
      %c0_35 = arith.constant 0 : index
      %c0_36 = arith.constant 0 : index
      %35 = vector.load %arg8[%c0_34, %c0_35, %c0_36] : memref<8x8x1xf32, #tpu.memory_space<vmem>>, vector<8x8x1xf32>
      tpu.vector_store %arg8[%c0_34, %c0_35, %c0_36], %34 {strides = array<i32>} : memref<8x8x1xf32, #tpu.memory_space<vmem>>, vector<8x8x1xf32>,
      %cst_37 = arith.constant 0.000000e+00 : f32
      %36 = vector.broadcast %cst_37 : f32 to vector<8x8x1xf32>
      %c0_38 = arith.constant 0 : index
      %c0_39 = arith.constant 0 : index
      %c0_40 = arith.constant 0 : index
      %37 = vector.load %arg9[%c0_38, %c0_39, %c0_40] : memref<8x8x1xf32, #tpu.memory_space<vmem>>, vector<8x8x1xf32>
      tpu.vector_store %arg9[%c0_38, %c0_39, %c0_40], %36 {strides = array<i32>} : memref<8x8x1xf32, #tpu.memory_space<vmem>>, vector<8x8x1xf32>,
      %cst_41 = arith.constant 0.000000e+00 : f32
      %38 = vector.broadcast %cst_41 : f32 to vector<8x8x32xf32>
      %c0_42 = arith.constant 0 : index
      %c0_43 = arith.constant 0 : index
      %c0_44 = arith.constant 0 : index
      %39 = vector.load %arg10[%c0_42, %c0_43, %c0_44] : memref<8x8x32xf32, #tpu.memory_space<vmem>>, vector<8x8x32xf32>
      tpu.vector_store %arg10[%c0_42, %c0_43, %c0_44], %38 {strides = array<i32>} : memref<8x8x32xf32, #tpu.memory_space<vmem>>, vector<8x8x32xf32>,
    } else {
    }
    %c0 = arith.constant 0 : index
    %c0_1 = arith.constant 0 : index
    %c0_2 = arith.constant 0 : index
    %3 = vector.load %arg3[%c0, %c0_1, %c0_2] : memref<8x8x32xf32, #tpu.memory_space<vmem>>, vector<8x8x32xf32>
    %cst = arith.constant 0.176776692 : f32
    %4 = vector.broadcast %cst : f32 to vector<8x8x32xf32>
    %5 = arith.mulf %3, %4 : vector<8x8x32xf32>
    %c0_3 = arith.constant 0 : index
    %c0_4 = arith.constant 0 : index
    %c0_5 = arith.constant 0 : index
    %6 = vector.load %arg4[%c0_3, %c0_4, %c0_5] : memref<8x8x32xf32, #tpu.memory_space<vmem>>, vector<8x8x32xf32>
    %c0_6 = arith.constant 0 : index
    %c0_7 = arith.constant 0 : index
    %c0_8 = arith.constant 0 : index
    %7 = vector.load %arg5[%c0_6, %c0_7, %c0_8] : memref<8x8x32xf32, #tpu.memory_space<vmem>>, vector<8x8x32xf32>
    "tpu.trace_start"() <{level = 10 : i32, message = "gqd,gkd->gqk"}> : () -> ()
    %cst_9 = arith.constant dense<0.000000e+00> : vector<8x8x8xf32>
    %8 = tpu.matmul %5, %6, %cst_9 {dimension_numbers = #tpu.dot_dimension_numbers<[2], [2], [1], [1], [0, 0, 0, 1, 1, 1], [0], [0]>} : vector<8x8x32xf32>, vector<8x8x32xf32>, vector<8x8x8xf32> -> vector<8x8x8xf32>
    "tpu.trace_stop"() : () -> ()
    %c0_10 = arith.constant 0 : index
    %c0_11 = arith.constant 0 : index
    %c0_12 = arith.constant 0 : index
    %9 = vector.load %arg8[%c0_10, %c0_11, %c0_12] : memref<8x8x1xf32, #tpu.memory_space<vmem>>, vector<8x8x1xf32>
    %cst_13 = arith.constant dense<0xFF800000> : vector<8x8xf32>
    %10 = vector.multi_reduction <maximumf>, %8, %cst_13 [2] : vector<8x8x8xf32> to vector<8x8xf32>
    %11 = vector.shape_cast %10 : vector<8x8xf32> to vector<8x8x1xf32>
    %12 = arith.maximumf %9, %11 : vector<8x8x1xf32>
    %13 = arith.subf %9, %12 : vector<8x8x1xf32>
    %14 = math.exp %13 : vector<8x8x1xf32>
    %15 = vector.broadcast %12 : vector<8x8x1xf32> to vector<8x8x8xf32>
    %16 = arith.subf %8, %15 : vector<8x8x8xf32>
    %17 = math.exp %16 : vector<8x8x8xf32>
    %c0_14 = arith.constant 0 : index
    %c0_15 = arith.constant 0 : index
    %c0_16 = arith.constant 0 : index
    %18 = vector.load %arg9[%c0_14, %c0_15, %c0_16] : memref<8x8x1xf32, #tpu.memory_space<vmem>>, vector<8x8x1xf32>
    %19 = arith.mulf %14, %18 : vector<8x8x1xf32>
    %cst_17 = arith.constant dense<0.000000e+00> : vector<8x8xf32>
    %20 = vector.multi_reduction <add>, %17, %cst_17 [2] : vector<8x8x8xf32> to vector<8x8xf32>
    %21 = vector.shape_cast %20 : vector<8x8xf32> to vector<8x8x1xf32>
    %22 = arith.addf %19, %21 : vector<8x8x1xf32>
    %c0_18 = arith.constant 0 : index
    %c0_19 = arith.constant 0 : index
    %c0_20 = arith.constant 0 : index
    %23 = vector.load %arg9[%c0_18, %c0_19, %c0_20] : memref<8x8x1xf32, #tpu.memory_space<vmem>>, vector<8x8x1xf32>
    tpu.vector_store %arg9[%c0_18, %c0_19, %c0_20], %22 {strides = array<i32>} : memref<8x8x1xf32, #tpu.memory_space<vmem>>, vector<8x8x1xf32>,
    "tpu.trace_start"() <{level = 10 : i32, message = "gqk,gkd->gqd"}> : () -> ()
    %cst_21 = arith.constant dense<0.000000e+00> : vector<8x8x32xf32>
    %24 = tpu.matmul %17, %7, %cst_21 {dimension_numbers = #tpu.dot_dimension_numbers<[2], [1], [1], [2], [0, 0, 0, 1, 1, 2], [0], [0]>} : vector<8x8x8xf32>, vector<8x8x32xf32>, vector<8x8x32xf32> -> vector<8x8x32xf32>
    "tpu.trace_stop"() : () -> ()
    %c0_22 = arith.constant 0 : index
    %c0_23 = arith.constant 0 : index
    %c0_24 = arith.constant 0 : index
    %25 = vector.load %arg10[%c0_22, %c0_23, %c0_24] : memref<8x8x32xf32, #tpu.memory_space<vmem>>, vector<8x8x32xf32>
    %26 = vector.broadcast %14 : vector<8x8x1xf32> to vector<8x8x32xf32>
    %27 = arith.mulf %26, %25 : vector<8x8x32xf32>
    %28 = arith.addf %27, %24 : vector<8x8x32xf32>
    %c0_25 = arith.constant 0 : index
    %c0_26 = arith.constant 0 : index
    %c0_27 = arith.constant 0 : index
    %29 = vector.load %arg10[%c0_25, %c0_26, %c0_27] : memref<8x8x32xf32, #tpu.memory_space<vmem>>, vector<8x8x32xf32>
    tpu.vector_store %arg10[%c0_25, %c0_26, %c0_27], %28 {strides = array<i32>} : memref<8x8x32xf32, #tpu.memory_space<vmem>>, vector<8x8x32xf32>,
    %c0_28 = arith.constant 0 : index
    %c0_29 = arith.constant 0 : index
    %c0_30 = arith.constant 0 : index
    %30 = vector.load %arg8[%c0_28, %c0_29, %c0_30] : memref<8x8x1xf32, #tpu.memory_space<vmem>>, vector<8x8x1xf32>
    tpu.vector_store %arg8[%c0_28, %c0_29, %c0_30], %12 {strides = array<i32>} : memref<8x8x1xf32, #tpu.memory_space<vmem>>, vector<8x8x1xf32>,
    %c0_i32_31 = arith.constant 0 : i32
    %31 = arith.cmpi eq, %arg2, %c0_i32_31 : i32
    %32 = arith.extui %31 : i1 to i32
    %c0_i32_32 = arith.constant 0 : i32
    %33 = arith.cmpi ne, %32, %c0_i32_32 : i32
    scf.if %33 {
      %c0_33 = arith.constant 0 : index
      %c0_34 = arith.constant 0 : index
      %c0_35 = arith.constant 0 : index
      %34 = vector.load %arg9[%c0_33, %c0_34, %c0_35] : memref<8x8x1xf32, #tpu.memory_space<vmem>>, vector<8x8x1xf32>
      %35 = tpu.reciprocal %34 {approx = true} : vector<8x8x1xf32> -> vector<8x8x1xf32>
      %c0_36 = arith.constant 0 : index
      %c0_37 = arith.constant 0 : index
      %c0_38 = arith.constant 0 : index
      %36 = vector.load %arg10[%c0_36, %c0_37, %c0_38] : memref<8x8x32xf32, #tpu.memory_space<vmem>>, vector<8x8x32xf32>
      %37 = vector.broadcast %35 : vector<8x8x1xf32> to vector<8x8x32xf32>
      %38 = arith.mulf %36, %37 : vector<8x8x32xf32>
      %c0_39 = arith.constant 0 : index
      %c0_40 = arith.constant 0 : index
      %c0_41 = arith.constant 0 : index
      %39 = vector.load %arg6[%c0_39, %c0_40, %c0_41] : memref<8x8x32xf32, #tpu.memory_space<vmem>>, vector<8x8x32xf32>
      tpu.vector_store %arg6[%c0_39, %c0_40, %c0_41], %38 {strides = array<i32>} : memref<8x8x32xf32, #tpu.memory_space<vmem>>, vector<8x8x32xf32>,
      %c0_42 = arith.constant 0 : index
      %c0_43 = arith.constant 0 : index
      %c0_44 = arith.constant 0 : index
      %40 = vector.load %arg8[%c0_42, %c0_43, %c0_44] : memref<8x8x1xf32, #tpu.memory_space<vmem>>, vector<8x8x1xf32>
      %c0_45 = arith.constant 0 : index
      %c0_46 = arith.constant 0 : index
      %c0_47 = arith.constant 0 : index
      %41 = vector.load %arg9[%c0_45, %c0_46, %c0_47] : memref<8x8x1xf32, #tpu.memory_space<vmem>>, vector<8x8x1xf32>
      %42 = math.log %41 : vector<8x8x1xf32>
      %43 = arith.addf %40, %42 : vector<8x8x1xf32>
      %c0_48 = arith.constant 0 : index
      %c0_49 = arith.constant 0 : index
      %c0_50 = arith.constant 0 : index
      %44 = vector.load %arg7[%c0_48, %c0_49, %c0_50] : memref<8x8x1xf32, #tpu.memory_space<vmem>>, vector<8x8x1xf32>
      tpu.vector_store %arg7[%c0_48, %c0_49, %c0_50], %43 {strides = array<i32>} : memref<8x8x1xf32, #tpu.memory_space<vmem>>, vector<8x8x1xf32>,
    } else {
    }
    return
  }
  func.func @transform_0(%arg0: i32, %arg1: i32, %arg2: i32) -> (i32, i32, i32) {
    %c0_i32 = arith.constant 0 : i32
    %c0_i32_0 = arith.constant 0 : i32
    return %arg0, %arg1, %c0_i32 : i32, i32, i32
  }
  func.func @transform_1(%arg0: i32, %arg1: i32, %arg2: i32) -> (i32, i32, i32) {
    %c0_i32 = arith.constant 0 : i32
    %c0_i32_0 = arith.constant 0 : i32
    return %arg0, %arg2, %c0_i32 : i32, i32, i32
  }
  func.func @transform_2(%arg0: i32, %arg1: i32, %arg2: i32) -> (i32, i32, i32) {
    %c0_i32 = arith.constant 0 : i32
    %c0_i32_0 = arith.constant 0 : i32
    return %arg0, %arg2, %c0_i32 : i32, i32, i32
  }
  func.func @transform_3(%arg0: i32, %arg1: i32, %arg2: i32) -> (i32, i32, i32) {
    %c0_i32 = arith.constant 0 : i32
    %c0_i32_0 = arith.constant 0 : i32
    return %arg0, %arg1, %c0_i32 : i32, i32, i32
  }
  func.func @transform_4(%arg0: i32, %arg1: i32, %arg2: i32) -> (i32, i32, i32) {
    %c0_i32 = arith.constant 0 : i32
    %c0_i32_0 = arith.constant 0 : i32
    return %arg0, %arg1, %c0_i32 : i32, i32, i32
  }
}

</mosaic_0001>

<bundles_post_ra>
// kernel: tpu_custom_call.1
= control target key start
LH: loop header
LB: loop body
LE: loop exit
PB: predicated region body
PF: predicated region fallthrough
CT: control target
= control target key end

     0   :  { %10 = vsyncpa [#allocation6], 0  ;;  %s2490_s0 = inlined_call_operand.hbm [shape: f32[8,8,32], index: 0, kind: input, shape index: {}]   ;;  %s2491_s1 = inlined_call_operand.hbm [shape: f32[8,8,32], index: 1, kind: input, shape index: {}]   ;;  %s2492_s2 = inlined_call_operand.hbm [shape: f32[8,8,32], index: 2, kind: input, shape index: {}]   ;;  %s2493_s3 = inlined_call_operand.hbm [shape: f32[8,8,32], index: 3, kind: output, shape index: {0}]   ;;  %s2494_s4 = inlined_call_operand.hbm [shape: f32[8,8,1], index: 4, kind: output, shape index: {1}]  }
   0x1   :  { %11 = vsyncpa [#allocation9], 0 }
   0x2   :  { %12 = vsyncpa [#allocation7], 0 }
   0x3   :  { %13 = vsyncpa [#allocation13], 0  ;;  %s2076_s15 = smov [#allocation8]   ;;  %s2077_s17 = smov [#allocation5]  }
   0x4   :  { %s31_s16 = sshll.u32 %s2076_s15, 4  ;;  %s19_s18 = sshll.u32 %s2077_s17, 4  ;;  %s32_s16 = int_to_ptr.vmem [resolvable:$true] %s31_s16  ;;  %s2112_s18 = int_to_ptr.vmem [resolvable:$true] %s19_s18 }
   0x5   :  { %s1958_s21 = scalar_lea.hbm %s2491_s1, 1024 }
   0x6   :  { %p1959_p0 = scmp.ne.s32.totalorder %s2491_s1, %s1958_s21  ;;  %p1962_p1 = scmp.lt.u32.totalorder %s1958_s21, %s2491_s1 }
   0x8   :  { %p1964_p2 = pnand %p1962_p1, %p1959_p0 }
   0xa   :  { %1967 = shalt.err (!%p1964_p2)
}
   0xb   :  { %s1968_s26 = scalar_lea.vmem %s32_s16, 1024  ;;  %p1973_p4 = scmp.lt.s32.totalorder %s32_s16, %s32_s16 }
   0xc   :  { %p1969_p3 = scmp.ne.s32.totalorder %s32_s16, %s1968_s26  ;;  %p1974_p5 = scmp.lt.s32.totalorder %s1968_s26, %s1968_s26 }
   0xe   :  { %p1975_p6 = por %p1974_p5, %p1973_p4 }
  0x10   :  { %p1976_p7 = pnand %p1975_p6, %p1969_p3 }
  0x12   :  { %1979 = shalt.err (!%p1976_p7)
}
  0x13   :  { %s2078_s27 = smov 128   ;;  %s2079_s28 = smov 8  }
  0x14   :  { %37 = dma.hbm_to_vmem [thread:$0]  %s2491_s1, 1024, %s32_s16, [#allocation9], %s2078_s27, %s2078_s27, %s2079_s28  }
  0x15   :  { %s1980_s7 = scalar_lea.hbm %s2490_s0, 1024 }
  0x16   :  { %p1981_p8 = scmp.ne.s32.totalorder %s2490_s0, %s1980_s7  ;;  %p1984_p9 = scmp.lt.u32.totalorder %s1980_s7, %s2490_s0 }
  0x18   :  { %p1986_p10 = pnand %p1984_p9, %p1981_p8 }
  0x1a   :  { %1989 = shalt.err (!%p1986_p10)
}
  0x1b   :  { %s1990_s12 = scalar_lea.vmem %s2112_s18, 1024  ;;  %p1995_p12 = scmp.lt.s32.totalorder %s2112_s18, %s2112_s18 }
  0x1c   :  { %p1991_p11 = scmp.ne.s32.totalorder %s2112_s18, %s1990_s12  ;;  %p1996_p13 = scmp.lt.s32.totalorder %s1990_s12, %s1990_s12 }
  0x1e   :  { %p1997_p0 = por %p1996_p13, %p1995_p12 }
  0x20   :  { %p1998_p1 = pnand %p1997_p0, %p1991_p11 }
  0x22   :  { %2001 = shalt.err (!%p1998_p1)
}
  0x23   :  { %25 = dma.hbm_to_vmem [thread:$0]  %s2490_s0, 1024, %s2112_s18, [#allocation6], %s2078_s27, %s2078_s27, %s2079_s28  }
  0x24   :  { %s2080_s14 = smov [#allocation10]   ;;  %s2002_s19 = scalar_lea.hbm %s2492_s2, 1024 }
  0x25   :  { %s43_s15 = sshll.u32 %s2080_s14, 4  ;;  %p2003_p2 = scmp.ne.s32.totalorder %s2492_s2, %s2002_s19  ;;  %s44_s15 = int_to_ptr.vmem [resolvable:$true] %s43_s15 }
  0x26   :  { %p2006_p3 = scmp.lt.u32.totalorder %s2002_s19, %s2492_s2 }
  0x28   :  { %p2008_p4 = pnand %p2006_p3, %p2003_p2 }
  0x2a   :  { %2011 = shalt.err (!%p2008_p4)
}
  0x2b   :  { %s2012_s24 = scalar_lea.vmem %s44_s15, 1024  ;;  %p2017_p6 = scmp.lt.s32.totalorder %s44_s15, %s44_s15 }
  0x2c   :  { %p2013_p5 = scmp.ne.s32.totalorder %s44_s15, %s2012_s24  ;;  %p2018_p7 = scmp.lt.s32.totalorder %s2012_s24, %s2012_s24 }
  0x2e   :  { %p2019_p8 = por %p2018_p7, %p2017_p6 }
  0x30   :  { %p2020_p9 = pnand %p2019_p8, %p2013_p5 }
  0x32   :  { %2023 = shalt.err (!%p2020_p9)
}
  0x33   :  { %49 = dma.hbm_to_vmem [thread:$0]  %s2492_s2, 1024, %s44_s15, [#allocation9], %s2078_s27, %s2078_s27, %s2079_s28  }
  0x34   :  { %2068 = dma.done.wait [#allocation6], 1024  }
  0x35   :  { %2069 = vsyncadd [#allocation6], 4294966272 }
  0x36   :  { %2070 = dma.done.wait [#allocation9], 2048  }
  0x37   :  { %2071 = vsyncadd [#allocation9], 4294965248  ;;  %vm80_vm0 = vcmask 261120   ;;  %v2081_v0 = vmov 0.0   ;;  %vm2082_vm1 = vmmov 0   ;;  %v105_v1 = vld [vmem:[#allocation8] sm:$0xff] }
  0x38   :  { %1801 = vmatprep.subr.mxu0 %v2081_v0  ;;  %81 = vst.msk [vmem:[#allocation4] sm:$0xff] %vm80_vm0, %v2081_v0  ;;  %82 = vst.msk [vmem:[#allocation4 + $0x8] sm:$0xff] %vm80_vm0, %v2081_v0  ;;  %1803 = vmatprep.mubr.msk.f32.mxu0 %vm2082_vm1, %v2081_v0  ;;  %v89_v2 = vld [vmem:[#allocation5] sm:$0xff]  ;;  %v106_v3 = vld [vmem:[#allocation8 + $0x8] sm:$0xff]  ;;  %vm63_vm2 = vcmask 7168   ;;  %v2083_v25 = vmov -inf  }
  0x39   :  { %83 = vst.msk [vmem:[#allocation4 + $0x10] sm:$0xff] %vm80_vm0, %v2081_v0  ;;  %84 = vst.msk [vmem:[#allocation4 + $0x18] sm:$0xff] %vm80_vm0, %v2081_v0  ;;  %1806 = vmatprep.subr.mxu1 %v2081_v0  ;;  %1808 = vmatprep.mubr.msk.f32.mxu1 %vm2082_vm1, %v2081_v0  ;;  %v97_v4 = vmul.f32 0.17677669, %v89_v2  ;;  %v90_v5 = vld [vmem:[#allocation5 + $0x8] sm:$0xff]  ;;  %v91_v6 = vld [vmem:[#allocation5 + $0x10] sm:$0xff] }
  0x3a   :  { %85 = vst.msk [vmem:[#allocation4 + $0x20] sm:$0xff] %vm80_vm0, %v2081_v0  ;;  %86 = vst.msk [vmem:[#allocation4 + $0x28] sm:$0xff] %vm80_vm0, %v2081_v0  ;;  %1802 = vmatpush3.xpose.msk.msra.mxu0 %vm80_vm0, %v105_v1  ;;  %1807 = vmatpush3.xpose.msk.msra.mxu1 %vm80_vm0, %v106_v3  ;;  %v98_v7 = vmul.f32 0.17677669, %v90_v5  ;;  %v107_v8 = vld [vmem:[#allocation8 + $0x10] sm:$0xff]  ;;  %v92_v9 = vld [vmem:[#allocation5 + $0x18] sm:$0xff] }
  0x3b   :  { %87 = vst.msk [vmem:[#allocation4 + $0x30] sm:$0xff] %vm80_vm0, %v2081_v0  ;;  %88 = vst.msk [vmem:[#allocation4 + $0x38] sm:$0xff] %vm80_vm0, %v2081_v0  ;;  %1811 = vmatprep.subr.mxu0 %v2081_v0  ;;  %1816 = vmatprep.subr.mxu1 %v2081_v0  ;;  %v108_v10 = vld [vmem:[#allocation8 + $0x18] sm:$0xff]  ;;  %v99_v11 = vmul.f32 0.17677669, %v91_v6  ;;  %v93_v13 = vld [vmem:[#allocation5 + $0x20] sm:$0xff] }
  0x3c   :  { %v100_v12 = vmul.f32 0.17677669, %v92_v9  ;;  %v109_v14 = vld [vmem:[#allocation8 + $0x20] sm:$0xff]  ;;  %v94_v15 = vld [vmem:[#allocation5 + $0x28] sm:$0xff]  ;;  %v101_v17 = vmul.f32 0.17677669, %v93_v13 }
  0x3d   :  { %1804 = vmatmul.mubr.msk.f32.vlgmr.msra.gmra.mrb[0].mxu0 %vm80_vm0, %v97_v4  ;;  %1809 = vmatmul.mubr.msk.f32.vlgmr.msra.gmra.mrb[0].mxu1 %vm80_vm0, %v98_v7  ;;  %v110_v16 = vld [vmem:[#allocation8 + $0x28] sm:$0xff]  ;;  %v102_v18 = vmul.f32 0.17677669, %v94_v15  ;;  %v95_v19 = vld [vmem:[#allocation5 + $0x30] sm:$0xff]  ;;  %v96_v21 = vld [vmem:[#allocation5 + $0x38] sm:$0xff]  ;;  %64 = vst.msk [vmem:[#allocation2] sm:$0xff] %vm63_vm2, %v2083_v25 }
  0x3e   :  { %1812 = vmatpush3.xpose.msk.msra.mxu0 %vm80_vm0, %v107_v8  ;;  %1813 = vmatprep.mubr.msk.f32.mxu0 %vm2082_vm1, %v2081_v0  ;;  %v111_v20 = vld [vmem:[#allocation8 + $0x30] sm:$0xff]  ;;  %v112_v22 = vld [vmem:[#allocation8 + $0x38] sm:$0xff]  ;;  %v103_v23 = vmul.f32 0.17677669, %v95_v19  ;;  %v104_v24 = vmul.f32 0.17677669, %v96_v21 }
  0x3f   :  { %1817 = vmatpush3.xpose.msk.msra.mxu1 %vm80_vm0, %v108_v10  ;;  %1818 = vmatprep.mubr.msk.f32.mxu1 %vm2082_vm1, %v2081_v0  ;;  %65 = vst.msk [vmem:[#allocation2 + $0x8] sm:$0xff] %vm63_vm2, %v2083_v25  ;;  %66 = vst.msk [vmem:[#allocation2 + $0x10] sm:$0xff] %vm63_vm2, %v2083_v25  ;;  %vm738_vm3 = vcmask 64512   ;;  %v2084_v50 = vmov 0   ;;  %v114_v21 = vld [vmem:[#allocation10 + $0x8] sm:$0xff]  ;;  %s2085_s2 = smov [#allocation12]  }
  0x40   :  { %1821 = vmatprep.subr.mxu0 %v2081_v0  ;;  %1826 = vmatprep.subr.mxu1 %v2081_v0  ;;  %67 = vst.msk [vmem:[#allocation2 + $0x18] sm:$0xff] %vm63_vm2, %v2083_v25  ;;  %68 = vst.msk [vmem:[#allocation2 + $0x20] sm:$0xff] %vm63_vm2, %v2083_v25  ;;  %s1728_s25 = sshll.u32 %s2085_s2, 4  ;;  %s1729_s25 = int_to_ptr.vmem [resolvable:$true] %s1728_s25 }
  0x41   :  { %1814 = vmatmul.mubr.msk.f32.vlgmr.msra.gmra.mrb[2].mxu0 %vm80_vm0, %v99_v11  ;;  %69 = vst.msk [vmem:[#allocation2 + $0x28] sm:$0xff] %vm63_vm2, %v2083_v25  ;;  %70 = vst.msk [vmem:[#allocation2 + $0x30] sm:$0xff] %vm63_vm2, %v2083_v25  ;;  %1892 = vset.pattern.permute.xlu0 %v2084_v50  ;;  %s2024_s26 = scalar_lea.vmem %s1729_s25, 1024  ;;  %p2029_p11 = scmp.lt.s32.totalorder %s1729_s25, %s1729_s25 }
  0x42   :  { %1819 = vmatmul.mubr.msk.f32.vlgmr.msra.gmra.mrb[2].mxu1 %vm80_vm0, %v100_v12  ;;  %1822 = vmatpush3.xpose.msk.msra.mxu0 %vm80_vm0, %v109_v14  ;;  %71 = vst.msk [vmem:[#allocation2 + $0x38] sm:$0xff] %vm63_vm2, %v2083_v25  ;;  %72 = vst.msk [vmem:[#allocation3] sm:$0xff] %vm63_vm2, %v2081_v0  ;;  %p2025_p10 = scmp.ne.s32.totalorder %s1729_s25, %s2024_s26  ;;  %p2030_p12 = scmp.lt.s32.totalorder %s2024_s26, %s2024_s26 }
  0x43   :  { %1823 = vmatprep.mubr.msk.f32.mxu0 %vm2082_vm1, %v2081_v0  ;;  %1827 = vmatpush3.xpose.msk.msra.mxu1 %vm80_vm0, %v110_v16  ;;  %73 = vst.msk [vmem:[#allocation3 + $0x8] sm:$0xff] %vm63_vm2, %v2081_v0  ;;  %74 = vst.msk [vmem:[#allocation3 + $0x10] sm:$0xff] %vm63_vm2, %v2081_v0 }
  0x44   :  { %1828 = vmatprep.mubr.msk.f32.mxu1 %vm2082_vm1, %v2081_v0  ;;  %1831 = vmatprep.subr.mxu0 %v2081_v0  ;;  %75 = vst.msk [vmem:[#allocation3 + $0x18] sm:$0xff] %vm63_vm2, %v2081_v0  ;;  %76 = vst.msk [vmem:[#allocation3 + $0x20] sm:$0xff] %vm63_vm2, %v2081_v0  ;;  %v2282_v51 = vld [vmem:[#allocation2] sm:$0xff]  ;;  %p2031_p13 = por %p2030_p12, %p2029_p11 }
  0x45   :  { %1824 = vmatmul.mubr.msk.f32.vlgmr.msra.gmra.mrb[4].mxu0 %vm80_vm0, %v101_v17  ;;  %1836 = vmatprep.subr.mxu1 %v2081_v0  ;;  %77 = vst.msk [vmem:[#allocation3 + $0x28] sm:$0xff] %vm63_vm2, %v2081_v0  ;;  %78 = vst.msk [vmem:[#allocation3 + $0x30] sm:$0xff] %vm63_vm2, %v2081_v0 }
  0x46   :  { %1829 = vmatmul.mubr.msk.f32.vlgmr.msra.gmra.mrb[4].mxu1 %vm80_vm0, %v102_v18  ;;  %1832 = vmatpush3.xpose.msk.msra.mxu0 %vm80_vm0, %v111_v20  ;;  %79 = vst.msk [vmem:[#allocation3 + $0x38] sm:$0xff] %vm63_vm2, %v2081_v0  ;;  %v2287_v54 = vld [vmem:[#allocation2 + $0x8] sm:$0xff]  ;;  %v2289_v55 = vld [vmem:[#allocation2 + $0x10] sm:$0xff]  ;;  %v113_v18 = vld [vmem:[#allocation10] sm:$0xff]  ;;  %p2032_p0 = pnand %p2031_p13, %p2025_p10 }
  0x47   :  { %1833 = vmatprep.mubr.msk.f32.mxu0 %vm2082_vm1, %v2081_v0  ;;  %1837 = vmatpush3.xpose.msk.msra.mxu1 %vm80_vm0, %v112_v22  ;;  %v2302_v61 = vld [vmem:[#allocation2 + $0x18] sm:$0xff]  ;;  %v2304_v62 = vld [vmem:[#allocation2 + $0x20] sm:$0xff] }
  0x48   :  { %1838 = vmatprep.mubr.msk.f32.mxu1 %vm2082_vm1, %v2081_v0  ;;  %1841 = vmatprep.subr.mxu0 %v2081_v0  ;;  %v2321_v6 = vld [vmem:[#allocation2 + $0x28] sm:$0xff]  ;;  %v2323_v7 = vld [vmem:[#allocation2 + $0x30] sm:$0xff] }
  0x49   :  { %1834 = vmatmul.mubr.msk.f32.vlgmr.msra.gmra.mrb[6].mxu0 %vm80_vm0, %v103_v23  ;;  %1846 = vmatprep.subr.mxu1 %v2081_v0  ;;  %v2340_v14 = vld [vmem:[#allocation2 + $0x38] sm:$0xff] }
  0x4a   :  { %1839 = vmatmul.mubr.msk.f32.vlgmr.msra.gmra.mrb[6].mxu1 %vm80_vm0, %v104_v24  ;;  %1843 = vmatprep.mubr.msk.f32.mxu0 %vm2082_vm1, %v2081_v0 }
  0x4b   :  { %1848 = vmatprep.mubr.msk.f32.mxu1 %vm2082_vm1, %v2081_v0  ;;  %1893 = vset.pattern.permute.xlu1 %v2084_v50 }
  0x4c   :  { %1842 = vmatpush3.msra.mxu0 %v113_v18  ;;  %1847 = vmatpush3.msra.mxu1 %v114_v21 }
  0x4d   :  { %1851 = vmatprep.subr.mxu0 %v2081_v0  ;;  %1856 = vmatprep.subr.mxu1 %v2081_v0 }
 0x110   :  { %v2250_v26 = vpop.f32.mrb[0].mxu0  ;;  %v2252_v27 = vpop.f32.mrb[0].mxu1 }
 0x111   :  { %v1805_v28 = vpop.f32.mrb[1].mxu0  ;;  %v739_v29 = vsel %vm738_vm3, %v2250_v26, -inf  ;;  %v1810_v30 = vpop.f32.mrb[1].mxu1  ;;  %v742_v31 = vsel %vm738_vm3, %v2252_v27, -inf }
 0x112   :  { %740 = vmax.xlane.f32.xlu0 %v739_v29 }
 0x114   :  { %v2258_v32 = vpop.f32.mrb[2].mxu0 }
 0x115   :  { %v1815_v33 = vpop.f32.mrb[3].mxu0  ;;  %v745_v34 = vsel %vm738_vm3, %v2258_v32, -inf  ;;  %v2262_v35 = vpop.f32.mrb[2].mxu1 }
 0x116   :  { %743 = vmax.xlane.f32.xlu0 %v742_v31  ;;  %746 = vmax.xlane.f32.xlu1 %v745_v34  ;;  %v1820_v36 = vpop.f32.mrb[3].mxu1  ;;  %v748_v37 = vsel %vm738_vm3, %v2262_v35, -inf }
 0x118   :  { %v2266_v38 = vpop.f32.mrb[4].mxu0 }
 0x119   :  { %v1825_v39 = vpop.f32.mrb[5].mxu0  ;;  %v751_v40 = vsel %vm738_vm3, %v2266_v38, -inf  ;;  %v2270_v41 = vpop.f32.mrb[4].mxu1 }
 0x11a   :  { %749 = vmax.xlane.f32.xlu1 %v748_v37  ;;  %752 = vmax.xlane.f32.xlu0 %v751_v40  ;;  %v1830_v42 = vpop.f32.mrb[5].mxu1  ;;  %v754_v43 = vsel %vm738_vm3, %v2270_v41, -inf  ;;  %v115_v37 = vld [vmem:[#allocation10 + $0x10] sm:$0xff] }
 0x11c   :  { %v2274_v44 = vpop.f32.mrb[6].mxu0 }
 0x11d   :  { %v1835_v45 = vpop.f32.mrb[7].mxu0  ;;  %v757_v46 = vsel %vm738_vm3, %v2274_v44, -inf  ;;  %v2278_v47 = vpop.f32.mrb[6].mxu1 }
 0x11e   :  { %755 = vmax.xlane.f32.xlu1 %v754_v43  ;;  %758 = vmax.xlane.f32.xlu0 %v757_v46  ;;  %v1840_v48 = vpop.f32.mrb[7].mxu1  ;;  %v760_v49 = vsel %vm738_vm3, %v2278_v47, -inf }
 0x122   :  { %761 = vmax.xlane.f32.xlu1 %v760_v49 }
 0x19f   :  { %v741_v52 = vpop.xlane.xlu0 %740 }
 0x1a0   :  { %v2285_v53 = vmax.f32 %v2282_v51, %v741_v52 }
 0x1a2   :  { %v771_v56 = vsub.f32 %v2282_v51, %v2285_v53  ;;  %1572 = vst.msk [vmem:[#allocation2] sm:$0xff] %vm63_vm2, %v2285_v53  ;;  %797 = vperm.xlu0 %1892, %v2285_v53  }
 0x1a3   :  { %v744_v57 = vpop.xlane.xlu0 %743  ;;  %v747_v58 = vpop.xlane.xlu1 %746 }
 0x1a4   :  { %v2297_v59 = vmax.f32 %v2287_v54, %v744_v57  ;;  %v2300_v60 = vmax.f32 %v2289_v55, %v747_v58 }
 0x1a6   :  { %v772_v63 = vsub.f32 %v2287_v54, %v2297_v59  ;;  %1573 = vst.msk [vmem:[#allocation2 + $0x8] sm:$0xff] %vm63_vm2, %v2297_v59  ;;  %802 = vperm.xlu1 %1893, %v2297_v59   ;;  %v773_v1 = vsub.f32 %v2289_v55, %v2300_v60  ;;  %1574 = vst.msk [vmem:[#allocation2 + $0x10] sm:$0xff] %vm63_vm2, %v2300_v60 }
 0x1a7   :  { %v750_v2 = vpop.xlane.xlu1 %749  ;;  %v753_v3 = vpop.xlane.xlu0 %752 }
 0x1a8   :  { %v2316_v4 = vmax.f32 %v2302_v61, %v750_v2  ;;  %v2319_v5 = vmax.f32 %v2304_v62, %v753_v3 }
 0x1aa   :  { %807 = vperm.xlu1 %1893, %v2300_v60   ;;  %v774_v8 = vsub.f32 %v2302_v61, %v2316_v4  ;;  %1575 = vst.msk [vmem:[#allocation2 + $0x18] sm:$0xff] %vm63_vm2, %v2316_v4  ;;  %v775_v9 = vsub.f32 %v2304_v62, %v2319_v5  ;;  %1576 = vst.msk [vmem:[#allocation2 + $0x20] sm:$0xff] %vm63_vm2, %v2319_v5 }
 0x1ab   :  { %v756_v10 = vpop.xlane.xlu1 %755  ;;  %v759_v11 = vpop.xlane.xlu0 %758 }
 0x1ac   :  { %v2335_v12 = vmax.f32 %v2321_v6, %v756_v10  ;;  %v2338_v13 = vmax.f32 %v2323_v7, %v759_v11  ;;  %v787_v54 = vmul.f32 1.442695, %v775_v9 }
 0x1ae   :  { %812 = vperm.xlu1 %1893, %v2316_v4   ;;  %v776_v15 = vsub.f32 %v2321_v6, %v2335_v12  ;;  %1577 = vst.msk [vmem:[#allocation2 + $0x28] sm:$0xff] %vm63_vm2, %v2335_v12  ;;  %v777_v16 = vsub.f32 %v2323_v7, %v2338_v13  ;;  %1578 = vst.msk [vmem:[#allocation2 + $0x30] sm:$0xff] %vm63_vm2, %v2338_v13 }
 0x1af   :  { %v762_v17 = vpop.xlane.xlu1 %761 }
 0x1b0   :  { %v2352_v19 = vmax.f32 %v2340_v14, %v762_v17  ;;  %v789_v51 = vmul.f32 1.442695, %v776_v15  ;;  %v791_v53 = vmul.f32 1.442695, %v777_v16 }
 0x1b2   :  { %817 = vperm.xlu1 %1893, %v2319_v5   ;;  %v778_v20 = vsub.f32 %v2340_v14, %v2352_v19  ;;  %1579 = vst.msk [vmem:[#allocation2 + $0x38] sm:$0xff] %vm63_vm2, %v2352_v19  ;;  %v859_v5 = vld [vmem:[#allocation3] sm:$0xff]  ;;  %v861_v14 = vld [vmem:[#allocation3 + $0x10] sm:$0xff] }
 0x1b4   :  { %v793_v55 = vmul.f32 1.442695, %v778_v20  ;;  %v862_v20 = vld [vmem:[#allocation3 + $0x18] sm:$0xff] }
 0x1b6   :  { %822 = vperm.xlu1 %1893, %v2335_v12  }
 0x1ba   :  { %827 = vperm.xlu1 %1893, %v2338_v13  }
 0x1be   :  { %832 = vperm.xlu1 %1893, %v2352_v19  }
 0x221   :  { %v798_v22 = vpop.permute.xlu0 %797 }
 0x222   :  { %v835_v23 = vsub.f32 %v2250_v26, %v798_v22 }
 0x224   :  { %v843_v24 = vmul.f32 1.442695, %v835_v23 }
 0x225   :  { %v803_v25 = vpop.permute.xlu1 %802 }
 0x226   :  { %1894 = vpow2.f32 %v843_v24  ;;  %v836_v28 = vsub.f32 %v2252_v27, %v803_v25 }
 0x228   :  { %v845_v29 = vmul.f32 1.442695, %v836_v28 }
 0x229   :  { %v808_v30 = vpop.permute.xlu1 %807 }
 0x22a   :  { %1896 = vpow2.f32 %v845_v29  ;;  %v837_v31 = vsub.f32 %v2258_v32, %v808_v30  ;;  %v116_v32 = vld [vmem:[#allocation10 + $0x18] sm:$0xff] }
 0x22c   :  { %v847_v33 = vmul.f32 1.442695, %v837_v31  ;;  %v781_v31 = vmul.f32 1.442695, %v772_v63 }
 0x22d   :  { %v813_v34 = vpop.permute.xlu1 %812 }
 0x22e   :  { %1898 = vpow2.f32 %v847_v33  ;;  %v838_v36 = vsub.f32 %v2262_v35, %v813_v34  ;;  %v783_v33 = vmul.f32 1.442695, %v773_v1  ;;  %v785_v34 = vmul.f32 1.442695, %v774_v8  ;;  %v860_v8 = vld [vmem:[#allocation3 + $0x8] sm:$0xff] }
 0x230   :  { %v1895_v39 = vpop.eup %1894  ;;  %v849_v40 = vmul.f32 1.442695, %v838_v36 }
 0x231   :  { %v818_v42 = vpop.permute.xlu1 %817  ;;  %1844 = vmatmul.mubr.msk.f32.vlgmr.msra.gmra.mrb[8].mxu0 %vm738_vm3, %v1895_v39  ;;  %v875_v26 = vsel %vm738_vm3, %v1895_v39, 0.0 }
 0x232   :  { %1900 = vpow2.f32 %v849_v40  ;;  %v839_v27 = vsub.f32 %v2266_v38, %v818_v42  ;;  %876 = vadd.xlane.f32.xlu1 %v875_v26  ;;  %1852 = vmatpush3.msra.mxu0 %v115_v37  ;;  %v117_v38 = vld [vmem:[#allocation10 + $0x20] sm:$0xff] }
 0x233   :  { %1853 = vmatprep.mubr.msk.f32.mxu0 %vm2082_vm1, %v2081_v0  ;;  %1861 = vmatprep.subr.mxu0 %v2081_v0  ;;  %v863_v42 = vld [vmem:[#allocation3 + $0x20] sm:$0xff] }
 0x234   :  { %v1897_v35 = vpop.eup %1896  ;;  %v851_v43 = vmul.f32 1.442695, %v839_v27 }
 0x235   :  { %1849 = vmatmul.mubr.msk.f32.vlgmr.msra.gmra.mrb[8].mxu1 %vm738_vm3, %v1897_v35  ;;  %v823_v45 = vpop.permute.xlu1 %822  ;;  %v878_v46 = vsel %vm738_vm3, %v1897_v35, 0.0 }
 0x236   :  { %1902 = vpow2.f32 %v851_v43  ;;  %v840_v48 = vsub.f32 %v2270_v41, %v823_v45  ;;  %879 = vadd.xlane.f32.xlu0 %v878_v46  ;;  %1857 = vmatpush3.msra.mxu1 %v116_v32  ;;  %v118_v41 = vld [vmem:[#allocation10 + $0x28] sm:$0xff] }
 0x237   :  { %1858 = vmatprep.mubr.msk.f32.mxu1 %vm2082_vm1, %v2081_v0  ;;  %1866 = vmatprep.subr.mxu1 %v2081_v0  ;;  %v864_v43 = vld [vmem:[#allocation3 + $0x28] sm:$0xff] }
 0x238   :  { %v1899_v49 = vpop.eup %1898  ;;  %v853_v50 = vmul.f32 1.442695, %v840_v48 }
 0x239   :  { %v828_v52 = vpop.permute.xlu1 %827  ;;  %1854 = vmatmul.mubr.msk.f32.vlgmr.msra.gmra.mrb[10].mxu0 %vm738_vm3, %v1899_v49  ;;  %v881_v57 = vsel %vm738_vm3, %v1899_v49, 0.0  ;;  %v865_v49 = vld [vmem:[#allocation3 + $0x30] sm:$0xff] }
 0x23a   :  { %1904 = vpow2.f32 %v853_v50  ;;  %v841_v58 = vsub.f32 %v2274_v44, %v828_v52  ;;  %882 = vadd.xlane.f32.xlu0 %v881_v57  ;;  %1862 = vmatpush3.msra.mxu0 %v117_v38  ;;  %v119_v44 = vld [vmem:[#allocation10 + $0x30] sm:$0xff] }
 0x23b   :  { %1863 = vmatprep.mubr.msk.f32.mxu0 %vm2082_vm1, %v2081_v0  ;;  %1871 = vmatprep.subr.mxu0 %v2081_v0 }
 0x23c   :  { %v1901_v2 = vpop.eup %1900  ;;  %v855_v3 = vmul.f32 1.442695, %v841_v58 }
 0x23d   :  { %1859 = vmatmul.mubr.msk.f32.vlgmr.msra.gmra.mrb[10].mxu1 %vm738_vm3, %v1901_v2  ;;  %v833_v10 = vpop.permute.xlu1 %832  ;;  %v884_v11 = vsel %vm738_vm3, %v1901_v2, 0.0 }
 0x23e   :  { %1906 = vpow2.f32 %v855_v3  ;;  %v842_v17 = vsub.f32 %v2278_v47, %v833_v10  ;;  %885 = vadd.xlane.f32.xlu1 %v884_v11  ;;  %1867 = vmatpush3.msra.mxu1 %v118_v41  ;;  %v120_v47 = vld [vmem:[#allocation10 + $0x38] sm:$0xff]  ;;  %v1663_v11 = vld [vmem:[#allocation2] sm:$0xff] }
 0x23f   :  { %1868 = vmatprep.mubr.msk.f32.mxu1 %vm2082_vm1, %v2081_v0  ;;  %1876 = vmatprep.subr.mxu1 %v2081_v0  ;;  %v866_v10 = vld [vmem:[#allocation3 + $0x38] sm:$0xff] }
 0x240   :  { %v1903_v18 = vpop.eup %1902  ;;  %v857_v21 = vmul.f32 1.442695, %v842_v17 }
 0x241   :  { %1864 = vmatmul.mubr.msk.f32.vlgmr.msra.gmra.mrb[12].mxu0 %vm738_vm3, %v1903_v18  ;;  %v887_v22 = vsel %vm738_vm3, %v1903_v18, 0.0 }
 0x242   :  { %1908 = vpow2.f32 %v857_v21  ;;  %888 = vadd.xlane.f32.xlu0 %v887_v22  ;;  %1872 = vmatpush3.msra.mxu0 %v119_v44 }
 0x243   :  { %1873 = vmatprep.mubr.msk.f32.mxu0 %vm2082_vm1, %v2081_v0  ;;  %1910 = vpow2.f32 %v781_v31 }
 0x244   :  { %v1905_v23 = vpop.eup %1904 }
 0x245   :  { %1869 = vmatmul.mubr.msk.f32.vlgmr.msra.gmra.mrb[12].mxu1 %vm738_vm3, %v1905_v23  ;;  %v890_v24 = vsel %vm738_vm3, %v1905_v23, 0.0 }
 0x246   :  { %891 = vadd.xlane.f32.xlu1 %v890_v24  ;;  %1877 = vmatpush3.msra.mxu1 %v120_v47 }
 0x247   :  { %1878 = vmatprep.mubr.msk.f32.mxu1 %vm2082_vm1, %v2081_v0  ;;  %v779_v0 = vmul.f32 1.442695, %v771_v56 }
 0x248   :  { %v1907_v25 = vpop.eup %1906 }
 0x249   :  { %1874 = vmatmul.mubr.msk.f32.vlgmr.msra.gmra.mrb[14].mxu0 %vm738_vm3, %v1907_v25  ;;  %v893_v28 = vsel %vm738_vm3, %v1907_v25, 0.0  ;;  %1912 = vpow2.f32 %v779_v0  ;;  %v1664_v25 = vld [vmem:[#allocation2 + $0x8] sm:$0xff] }
 0x24a   :  { %894 = vadd.xlane.f32.xlu0 %v893_v28  ;;  %1914 = vpow2.f32 %v783_v33 }
 0x24b   :  { %1916 = vpow2.f32 %v785_v34  ;;  %v1665_v34 = vld [vmem:[#allocation2 + $0x10] sm:$0xff] }
 0x24c   :  { %v1909_v29 = vpop.eup %1908  ;;  %1918 = vpow2.f32 %v787_v54 }
 0x24d   :  { %1879 = vmatmul.mubr.msk.f32.vlgmr.msra.gmra.mrb[14].mxu1 %vm738_vm3, %v1909_v29  ;;  %v896_v30 = vsel %vm738_vm3, %v1909_v29, 0.0  ;;  %1920 = vpow2.f32 %v789_v51  ;;  %v1911_v56 = vpop.eup %1910 }
 0x24e   :  { %897 = vadd.xlane.f32.xlu1 %v896_v30  ;;  %1922 = vpow2.f32 %v791_v53  ;;  %v868_v12 = vmul.f32 %v1911_v56, %v860_v8 }
 0x24f   :  { %1924 = vpow2.f32 %v793_v55 }
 0x253   :  { %v1913_v59 = vpop.eup %1912 }
 0x254   :  { %v1915_v60 = vpop.eup %1914  ;;  %v867_v6 = vmul.f32 %v1913_v59, %v859_v5 }
 0x255   :  { %v1917_v61 = vpop.eup %1916  ;;  %v869_v16 = vmul.f32 %v1915_v60, %v861_v14 }
 0x256   :  { %v1919_v62 = vpop.eup %1918  ;;  %v870_v39 = vmul.f32 %v1917_v61, %v862_v20 }
 0x257   :  { %v1921_v63 = vpop.eup %1920  ;;  %v871_v32 = vmul.f32 %v1919_v62, %v863_v42 }
 0x258   :  { %v1923_v1 = vpop.eup %1922  ;;  %v872_v48 = vmul.f32 %v1921_v63, %v864_v43 }
 0x259   :  { %v1925_v4 = vpop.eup %1924  ;;  %v873_v41 = vmul.f32 %v1923_v1, %v865_v49 }
 0x25a   :  { %v874_v47 = vmul.f32 %v1925_v4, %v866_v10 }
 0x25f   :  { %1515 = vperm.xlu1 %1893, %v1911_v56  }
 0x260   :  { %1510 = vperm.xlu0 %1892, %v1913_v59   ;;  %v1666_v59 = vld [vmem:[#allocation2 + $0x18] sm:$0xff] }
 0x263   :  { %1520 = vperm.xlu1 %1893, %v1915_v60  }
 0x264   :  { %1525 = vperm.xlu0 %1892, %v1917_v61  }
 0x267   :  { %1530 = vperm.xlu1 %1893, %v1919_v62  }
 0x268   :  { %1535 = vperm.xlu0 %1892, %v1921_v63  }
 0x26b   :  { %1540 = vperm.xlu1 %1893, %v1923_v1  }
 0x26c   :  { %1545 = vperm.xlu0 %1892, %v1925_v4   ;;  %v1667_v4 = vld [vmem:[#allocation2 + $0x20] sm:$0xff] }
 0x2bf   :  { %v877_v7 = vpop.xlane.xlu1 %876 }
 0x2c0   :  { %v899_v9 = vadd.f32 %v877_v7, %v867_v6 }
 0x2c2   :  { %908 = vst.msk [vmem:[#allocation3] sm:$0xff] %vm63_vm2, %v899_v9  ;;  %v1668_v9 = vld [vmem:[#allocation2 + $0x28] sm:$0xff] }
 0x2c3   :  { %v880_v13 = vpop.xlane.xlu0 %879 }
 0x2c4   :  { %v900_v15 = vadd.f32 %v880_v13, %v868_v12 }
 0x2c6   :  { %909 = vst.msk [vmem:[#allocation3 + $0x8] sm:$0xff] %vm63_vm2, %v900_v15 }
 0x2c7   :  { %v883_v19 = vpop.xlane.xlu0 %882 }
 0x2c8   :  { %v901_v36 = vadd.f32 %v883_v19, %v869_v16  ;;  %v1669_v16 = vld [vmem:[#allocation2 + $0x30] sm:$0xff] }
 0x2c9   :  { %v1583_v37 = vld [vmem:[#allocation3] sm:$0xff] }
 0x2ca   :  { %910 = vst.msk [vmem:[#allocation3 + $0x10] sm:$0xff] %vm63_vm2, %v901_v36  ;;  %1926 = vrcp.f32 %v1583_v37 }
 0x2cb   :  { %v886_v40 = vpop.xlane.xlu1 %885  ;;  %1928 = vlog2.f32 %v1583_v37 }
 0x2cc   :  { %v902_v26 = vadd.f32 %v886_v40, %v870_v39  ;;  %v1670_v39 = vld [vmem:[#allocation2 + $0x38] sm:$0xff] }
 0x2cd   :  { %v1584_v27 = vld [vmem:[#allocation3 + $0x8] sm:$0xff] }
 0x2ce   :  { %911 = vst.msk [vmem:[#allocation3 + $0x18] sm:$0xff] %vm63_vm2, %v902_v26  ;;  %1930 = vrcp.f32 %v1584_v27 }
 0x2cf   :  { %v889_v35 = vpop.xlane.xlu0 %888  ;;  %1932 = vlog2.f32 %v1584_v27 }
 0x2d0   :  { %v903_v45 = vadd.f32 %v889_v35, %v871_v32 }
 0x2d1   :  { %v1585_v46 = vld [vmem:[#allocation3 + $0x10] sm:$0xff] }
 0x2d2   :  { %912 = vst.msk [vmem:[#allocation3 + $0x20] sm:$0xff] %vm63_vm2, %v903_v45  ;;  %1934 = vrcp.f32 %v1585_v46 }
 0x2d3   :  { %v892_v38 = vpop.xlane.xlu1 %891  ;;  %1936 = vlog2.f32 %v1585_v46 }
 0x2d4   :  { %v1927_v50 = vpop.eup %1926  ;;  %v904_v52 = vadd.f32 %v892_v38, %v872_v48 }
 0x2d5   :  { %v1929_v57 = vpop.eup %1928  ;;  %1609 = vperm.xlu1 %1893, %v1927_v50   ;;  %v1586_v58 = vld [vmem:[#allocation3 + $0x18] sm:$0xff] }
 0x2d6   :  { %913 = vst.msk [vmem:[#allocation3 + $0x28] sm:$0xff] %vm63_vm2, %v904_v52  ;;  %1938 = vrcp.f32 %v1586_v58  ;;  %v1680_v2 = vmul.f32 0.6931472, %v1929_v57 }
 0x2d7   :  { %v895_v3 = vpop.xlane.xlu0 %894  ;;  %1940 = vlog2.f32 %v1586_v58 }
 0x2d8   :  { %v1931_v17 = vpop.eup %1930  ;;  %v905_v44 = vadd.f32 %v895_v3, %v873_v41  ;;  %v1695_v18 = vadd.f32 %v1680_v2, %v1663_v11 }
 0x2d9   :  { %v1933_v21 = vpop.eup %1932  ;;  %1614 = vperm.xlu0 %1892, %v1931_v17   ;;  %v1587_v22 = vld [vmem:[#allocation3 + $0x20] sm:$0xff] }
 0x2da   :  { %914 = vst.msk [vmem:[#allocation3 + $0x30] sm:$0xff] %vm63_vm2, %v905_v44  ;;  %1942 = vrcp.f32 %v1587_v22  ;;  %v1682_v23 = vmul.f32 0.6931472, %v1933_v21  ;;  %1703 = vst.msk [vmem:[#allocation12] sm:$0xff] %vm63_vm2, %v1695_v18 }
 0x2db   :  { %v898_v24 = vpop.xlane.xlu1 %897  ;;  %1944 = vlog2.f32 %v1587_v22 }
 0x2dc   :  { %v1935_v28 = vpop.eup %1934  ;;  %v906_v29 = vadd.f32 %v898_v24, %v874_v47  ;;  %v1696_v30 = vadd.f32 %v1682_v23, %v1664_v25 }
 0x2dd   :  { %v1937_v31 = vpop.eup %1936  ;;  %1619 = vperm.xlu1 %1893, %v1935_v28   ;;  %v1588_v0 = vld [vmem:[#allocation3 + $0x28] sm:$0xff] }
 0x2de   :  { %915 = vst.msk [vmem:[#allocation3 + $0x38] sm:$0xff] %vm63_vm2, %v906_v29  ;;  %1946 = vrcp.f32 %v1588_v0  ;;  %v1684_v33 = vmul.f32 0.6931472, %v1937_v31  ;;  %1704 = vst.msk [vmem:[#allocation12 + $0x8] sm:$0xff] %vm63_vm2, %v1696_v30 }
 0x2df   :  { %1948 = vlog2.f32 %v1588_v0 }
 0x2e0   :  { %v1939_v54 = vpop.eup %1938  ;;  %v1697_v51 = vadd.f32 %v1684_v33, %v1665_v34 }
 0x2e1   :  { %v1941_v53 = vpop.eup %1940  ;;  %1624 = vperm.xlu0 %1892, %v1939_v54   ;;  %v1589_v55 = vld [vmem:[#allocation3 + $0x30] sm:$0xff] }
 0x2e2   :  { %1950 = vrcp.f32 %v1589_v55  ;;  %v1686_v56 = vmul.f32 0.6931472, %v1941_v53  ;;  %1705 = vst.msk [vmem:[#allocation12 + $0x10] sm:$0xff] %vm63_vm2, %v1697_v51 }
 0x2e3   :  { %1952 = vlog2.f32 %v1589_v55 }
 0x2e4   :  { %v1943_v60 = vpop.eup %1942  ;;  %v1698_v61 = vadd.f32 %v1686_v56, %v1666_v59 }
 0x2e5   :  { %v1945_v62 = vpop.eup %1944  ;;  %1629 = vperm.xlu1 %1893, %v1943_v60   ;;  %v1590_v63 = vld [vmem:[#allocation3 + $0x38] sm:$0xff] }
 0x2e6   :  { %1954 = vrcp.f32 %v1590_v63  ;;  %v1688_v1 = vmul.f32 0.6931472, %v1945_v62  ;;  %1706 = vst.msk [vmem:[#allocation12 + $0x18] sm:$0xff] %vm63_vm2, %v1698_v61 }
 0x2e7   :  { %1956 = vlog2.f32 %v1590_v63 }
 0x2e8   :  { %v1947_v5 = vpop.eup %1946  ;;  %v1699_v6 = vadd.f32 %v1688_v1, %v1667_v4 }
 0x2e9   :  { %v1949_v7 = vpop.eup %1948  ;;  %1634 = vperm.xlu0 %1892, %v1947_v5  }
 0x2ea   :  { %v1690_v8 = vmul.f32 0.6931472, %v1949_v7  ;;  %1707 = vst.msk [vmem:[#allocation12 + $0x20] sm:$0xff] %vm63_vm2, %v1699_v6 }
 0x2ec   :  { %v1951_v12 = vpop.eup %1950  ;;  %v1700_v13 = vadd.f32 %v1690_v8, %v1668_v9 }
 0x2ed   :  { %v1953_v14 = vpop.eup %1952  ;;  %1639 = vperm.xlu1 %1893, %v1951_v12  }
 0x2ee   :  { %v1692_v15 = vmul.f32 0.6931472, %v1953_v14  ;;  %1708 = vst.msk [vmem:[#allocation12 + $0x28] sm:$0xff] %vm63_vm2, %v1700_v13 }
 0x2f0   :  { %v1955_v19 = vpop.eup %1954  ;;  %v1701_v20 = vadd.f32 %v1692_v15, %v1669_v16 }
 0x2f1   :  { %v1957_v36 = vpop.eup %1956  ;;  %1644 = vperm.xlu0 %1892, %v1955_v19  }
 0x2f2   :  { %v1694_v37 = vmul.f32 0.6931472, %v1957_v36  ;;  %1709 = vst.msk [vmem:[#allocation12 + $0x30] sm:$0xff] %vm63_vm2, %v1701_v20 }
 0x2f4   :  { %v1702_v40 = vadd.f32 %v1694_v37, %v1670_v39 }
 0x2f6   :  { %1710 = vst.msk [vmem:[#allocation12 + $0x38] sm:$0xff] %vm63_vm2, %v1702_v40 }
 0x2f7   :  { %2035 = shalt.err (!%p2032_p0)
}
 0x2f8   :  { %s2036_s5 = scalar_lea.hbm %s2494_s4, 1024 }
 0x2f9   :  { %p2037_p1 = scmp.ne.s32.totalorder %s2494_s4, %s2036_s5  ;;  %p2040_p2 = scmp.lt.u32.totalorder %s2036_s5, %s2494_s4 }
 0x2fb   :  { %p2042_p3 = pnand %p2040_p2, %p2037_p1 }
 0x2fd   :  { %2045 = shalt.err (!%p2042_p3)
}
 0x2fe   :  { %1734 = dma.vmem_to_hbm [thread:$0]  %s1729_s25, 1024, %s2494_s4, [#allocation13], %s2078_s27, %s2078_s27, %s2079_s28   ;;  %v1500_v42 = vld [vmem:[#allocation4] sm:$0xff]  ;;  %v1511_v26 = vpop.permute.xlu0 %1510  ;;  %v1516_v27 = vpop.permute.xlu1 %1515  ;;  %v1501_v35 = vld [vmem:[#allocation4 + $0x8] sm:$0xff]  ;;  %v1502_v38 = vld [vmem:[#allocation4 + $0x10] sm:$0xff] }
 0x2ff   :  { %v1548_v32 = vmul.f32 %v1511_v26, %v1500_v42  ;;  %v1549_v48 = vmul.f32 %v1516_v27, %v1501_v35  ;;  %v1503_v41 = vld [vmem:[#allocation4 + $0x18] sm:$0xff]  ;;  %v1504_v44 = vld [vmem:[#allocation4 + $0x20] sm:$0xff]  ;;  %v1505_v24 = vld [vmem:[#allocation4 + $0x28] sm:$0xff]  ;;  %s2086_s4 = smov [#allocation11]  }
 0x300   :  { %v1506_v0 = vld [vmem:[#allocation4 + $0x30] sm:$0xff]  ;;  %v1507_v55 = vld [vmem:[#allocation4 + $0x38] sm:$0xff]  ;;  %s1716_s12 = sshll.u32 %s2086_s4, 4  ;;  %s1717_s12 = int_to_ptr.vmem [resolvable:$true] %s1716_s12 }
 0x301   :  { %s2046_s1 = scalar_lea.vmem %s1717_s12, 1024  ;;  %p2051_p5 = scmp.lt.s32.totalorder %s1717_s12, %s1717_s12 }
 0x302   :  { %v1521_v49 = vpop.permute.xlu1 %1520  ;;  %v1526_v2 = vpop.permute.xlu0 %1525  ;;  %p2047_p4 = scmp.ne.s32.totalorder %s1717_s12, %s2046_s1  ;;  %p2052_p6 = scmp.lt.s32.totalorder %s2046_s1, %s2046_s1 }
 0x303   :  { %v1550_v58 = vmul.f32 %v1521_v49, %v1502_v38  ;;  %v1551_v17 = vmul.f32 %v1526_v2, %v1503_v41 }
 0x304   :  { %v985_v43 = vpop.f32.mrb[8].mxu0  ;;  %p2053_p7 = por %p2052_p6, %p2051_p5 }
 0x305   :  { %v1556_v45 = vadd.f32 %v1548_v32, %v985_v43  ;;  %v1845_v46 = vpop.f32.mrb[9].mxu0 }
 0x306   :  { %v1531_v18 = vpop.permute.xlu1 %1530  ;;  %v1536_v25 = vpop.permute.xlu0 %1535  ;;  %p2054_p8 = pnand %p2053_p7, %p2047_p4 }
 0x307   :  { %1564 = vst.msk [vmem:[#allocation4] sm:$0xff] %vm80_vm0, %v1556_v45  ;;  %v1552_v23 = vmul.f32 %v1531_v18, %v1504_v44  ;;  %v1553_v31 = vmul.f32 %v1536_v25, %v1505_v24 }
 0x308   :  { %v1058_v50 = vpop.f32.mrb[8].mxu1 }
 0x309   :  { %v1557_v52 = vadd.f32 %v1549_v48, %v1058_v50  ;;  %v1850_v57 = vpop.f32.mrb[9].mxu1 }
 0x30a   :  { %v1541_v33 = vpop.permute.xlu1 %1540  ;;  %v1546_v56 = vpop.permute.xlu0 %1545 }
 0x30b   :  { %1565 = vst.msk [vmem:[#allocation4 + $0x8] sm:$0xff] %vm80_vm0, %v1557_v52  ;;  %v1554_v53 = vmul.f32 %v1541_v33, %v1506_v0  ;;  %v1555_v62 = vmul.f32 %v1546_v56, %v1507_v55 }
 0x30c   :  { %v1131_v3 = vpop.f32.mrb[10].mxu0 }
 0x30d   :  { %v1558_v10 = vadd.f32 %v1550_v58, %v1131_v3  ;;  %v1855_v11 = vpop.f32.mrb[11].mxu0 }
 0x30e   :  { %v1599_v5 = vld [vmem:[#allocation4] sm:$0xff] }
 0x30f   :  { %1566 = vst.msk [vmem:[#allocation4 + $0x10] sm:$0xff] %vm80_vm0, %v1558_v10 }
 0x310   :  { %v1204_v21 = vpop.f32.mrb[10].mxu1 }
 0x311   :  { %v1559_v22 = vadd.f32 %v1551_v17, %v1204_v21  ;;  %v1860_v47 = vpop.f32.mrb[11].mxu1 }
 0x312   :  { %v1600_v8 = vld [vmem:[#allocation4 + $0x8] sm:$0xff] }
 0x313   :  { %1567 = vst.msk [vmem:[#allocation4 + $0x18] sm:$0xff] %vm80_vm0, %v1559_v22 }
 0x314   :  { %v1277_v28 = vpop.f32.mrb[12].mxu0 }
 0x315   :  { %v1560_v29 = vadd.f32 %v1552_v23, %v1277_v28  ;;  %v1865_v30 = vpop.f32.mrb[13].mxu0 }
 0x316   :  { %v1601_v13 = vld [vmem:[#allocation4 + $0x10] sm:$0xff] }
 0x317   :  { %1568 = vst.msk [vmem:[#allocation4 + $0x20] sm:$0xff] %vm80_vm0, %v1560_v29 }
 0x318   :  { %v1350_v34 = vpop.f32.mrb[12].mxu1 }
 0x319   :  { %v1561_v54 = vadd.f32 %v1553_v31, %v1350_v34  ;;  %v1870_v51 = vpop.f32.mrb[13].mxu1 }
 0x31a   :  { %v1602_v16 = vld [vmem:[#allocation4 + $0x18] sm:$0xff] }
 0x31b   :  { %1569 = vst.msk [vmem:[#allocation4 + $0x28] sm:$0xff] %vm80_vm0, %v1561_v54 }
 0x31c   :  { %v1423_v59 = vpop.f32.mrb[14].mxu0 }
 0x31d   :  { %v1562_v60 = vadd.f32 %v1554_v53, %v1423_v59  ;;  %v1875_v61 = vpop.f32.mrb[15].mxu0 }
 0x31e   :  { %v1603_v36 = vld [vmem:[#allocation4 + $0x20] sm:$0xff] }
 0x31f   :  { %1570 = vst.msk [vmem:[#allocation4 + $0x30] sm:$0xff] %vm80_vm0, %v1562_v60 }
 0x320   :  { %v1496_v63 = vpop.f32.mrb[14].mxu1 }
 0x321   :  { %v1563_v1 = vadd.f32 %v1555_v62, %v1496_v63  ;;  %v1880_v4 = vpop.f32.mrb[15].mxu1 }
 0x322   :  { %v1604_v40 = vld [vmem:[#allocation4 + $0x28] sm:$0xff] }
 0x323   :  { %1571 = vst.msk [vmem:[#allocation4 + $0x38] sm:$0xff] %vm80_vm0, %v1563_v1 }
 0x326   :  { %v1605_v27 = vld [vmem:[#allocation4 + $0x30] sm:$0xff] }
 0x32a   :  { %v1606_v43 = vld [vmem:[#allocation4 + $0x38] sm:$0xff] }
 0x354   :  { %v1610_v6 = vpop.permute.xlu1 %1609 }
 0x355   :  { %v1647_v7 = vmul.f32 %v1610_v6, %v1599_v5 }
 0x357   :  { %1655 = vst.msk [vmem:[#allocation11] sm:$0xff] %vm80_vm0, %v1647_v7 }
 0x358   :  { %v1615_v9 = vpop.permute.xlu0 %1614 }
 0x359   :  { %v1648_v12 = vmul.f32 %v1615_v9, %v1600_v8 }
 0x35b   :  { %1656 = vst.msk [vmem:[#allocation11 + $0x8] sm:$0xff] %vm80_vm0, %v1648_v12 }
 0x35c   :  { %v1620_v14 = vpop.permute.xlu1 %1619 }
 0x35d   :  { %v1649_v15 = vmul.f32 %v1620_v14, %v1601_v13 }
 0x35f   :  { %1657 = vst.msk [vmem:[#allocation11 + $0x10] sm:$0xff] %vm80_vm0, %v1649_v15 }
 0x360   :  { %v1625_v19 = vpop.permute.xlu0 %1624 }
 0x361   :  { %v1650_v20 = vmul.f32 %v1625_v19, %v1602_v16 }
 0x363   :  { %1658 = vst.msk [vmem:[#allocation11 + $0x18] sm:$0xff] %vm80_vm0, %v1650_v20 }
 0x364   :  { %v1630_v37 = vpop.permute.xlu1 %1629 }
 0x365   :  { %v1651_v39 = vmul.f32 %v1630_v37, %v1603_v36 }
 0x367   :  { %1659 = vst.msk [vmem:[#allocation11 + $0x20] sm:$0xff] %vm80_vm0, %v1651_v39 }
 0x368   :  { %v1635_v42 = vpop.permute.xlu0 %1634 }
 0x369   :  { %v1652_v26 = vmul.f32 %v1635_v42, %v1604_v40 }
 0x36b   :  { %1660 = vst.msk [vmem:[#allocation11 + $0x28] sm:$0xff] %vm80_vm0, %v1652_v26 }
 0x36c   :  { %v1640_v32 = vpop.permute.xlu1 %1639 }
 0x36d   :  { %v1653_v35 = vmul.f32 %v1640_v32, %v1605_v27 }
 0x36f   :  { %1661 = vst.msk [vmem:[#allocation11 + $0x30] sm:$0xff] %vm80_vm0, %v1653_v35 }
 0x370   :  { %v1645_v45 = vpop.permute.xlu0 %1644 }
 0x371   :  { %v1654_v46 = vmul.f32 %v1645_v45, %v1606_v43 }
 0x373   :  { %1662 = vst.msk [vmem:[#allocation11 + $0x38] sm:$0xff] %vm80_vm0, %v1654_v46 }
 0x374   :  { %2057 = shalt.err (!%p2054_p8)
}
 0x375   :  { %s2058_s15 = scalar_lea.hbm %s2493_s3, 1024 }
 0x376   :  { %p2059_p9 = scmp.ne.s32.totalorder %s2493_s3, %s2058_s15  ;;  %p2062_p10 = scmp.lt.u32.totalorder %s2058_s15, %s2493_s3 }
 0x378   :  { %p2064_p11 = pnand %p2062_p10, %p2059_p9 }
 0x37a   :  { %2067 = shalt.err (!%p2064_p11)
}
 0x37b   :  { %1722 = dma.vmem_to_hbm [thread:$0]  %s1717_s12, 1024, %s2493_s3, [#allocation7], %s2078_s27, %s2078_s27, %s2079_s28  }
 0x37c   :  { %2072 = dma.done.wait [#allocation7], 1024  }
 0x37d   :  { %2073 = vsyncadd [#allocation7], 4294966272 }
 0x37e   :  { %2074 = dma.done.wait [#allocation13], 1024  }
 0x37f   :  { %2075 = vsyncadd [#allocation13], 4294966272 }
 0x380   :  { %1741 = vsyncpa [#allocation6], 1 }
 0x381   :  { %1742 = vsyncpa [#allocation9], 1 }
 0x382   :  { %1743 = vsyncpa [#allocation7], 1 }
 0x383   :  { %1744 = vsyncpa [#allocation13], 1 }

</bundles_post_ra>
